<compile_context>
chip_gen: v7x
topology: tpu7x:2x2x1
jax: 0.10.0
libtpu: 0.0.40
codegen_flags: <defaults>
</compile_context>

<pallas_src>
import functools

import jax
import jax.numpy as jnp
from jax import lax
from jax.experimental import pallas as pl
from jax.experimental.pallas import tpu as pltpu

LANE = 128
SUBLANE = 8


def _round_up(x, m):
    return ((x + m - 1) // m) * m


def _masked_mse_kernel(yhat_ref, y_ref, num_ref, den_ref, acc_num, acc_den,
                       *, ignore_value, rows, tile_rows, tiles_per_split,
                       num_tiles):
    s = pl.program_id(0)          # split (parallel axis; maps to TCs on v7x)
    t = pl.program_id(1)          # tile within split (sequential reduction)

    @pl.when(t == 0)
    def _init():
        acc_num[...] = jnp.zeros_like(acc_num)
        acc_den[...] = jnp.zeros_like(acc_den)

    y = y_ref[...]
    yh = yhat_ref[...]
    # Compare in the *source* dtype so e.g. bf16 ignore_value rounding matches
    # on both sides of the comparison.
    ignore = jnp.asarray(ignore_value, dtype=y.dtype)

    tile_idx = s * tiles_per_split + t

    def _accumulate(valid):
        diff = jnp.where(valid,
                         yh.astype(jnp.float32) - y.astype(jnp.float32),
                         0.0)
        sq = diff * diff
        # (tr,128) -> (tr/8, 8, 128): reshape is free (no (8,128) tile-boundary
        # crossing); leading-axis sum is pure VALU vreg adds into the fixed
        # (8,128) accumulator -- no full-tile read-modify-write per step.
        acc_num[...] += sq.reshape(-1, SUBLANE, LANE).sum(axis=0)
        acc_den[...] += valid.astype(jnp.float32).reshape(
            -1, SUBLANE, LANE).sum(axis=0)

    # Fast path: interior tiles are guaranteed fully in-range -> no iota mask.
    @pl.when(tile_idx < num_tiles - 1)
    def _interior():
        _accumulate(y != ignore)

    # Edge path: last real tile (possibly ragged) or a duplicated clamped
    # block (tile_idx >= num_tiles): mask by global row index so garbage /
    # out-of-range rows never reach the accumulators.
    @pl.when(tile_idx >= num_tiles - 1)
    def _edge():
        row0 = tile_idx * tile_rows
        row_ids = row0 + lax.broadcasted_iota(jnp.int32, (tile_rows, LANE), 0)
        valid = jnp.logical_and(row_ids < rows, y != ignore)
        _accumulate(valid)

    @pl.when(t == pl.num_programs(1) - 1)
    def _finalize():
        # Sublane-only reduce; lane-dense (1,128) store. Wrapper sums lanes.
        num_ref[...] = jnp.sum(acc_num[...], axis=0, keepdims=True)
        den_ref[...] = jnp.sum(acc_den[...], axis=0, keepdims=True)


def _default_num_splits():
    # v7x has two TensorCores per chip (independent HBM paths); earlier
    # generations have one, where a second split is pure overhead.
    try:
        kind = jax.devices()[0].device_kind.lower()
        if "v7" in kind or "7x" in kind:
            return 2
    except Exception:
        pass
    return 1


def masked_mse_loss(y_hat, y, ignore_value, *, tile_rows=4096, num_splits=None):
    """Pallas implementation of MaskedMSELoss.forward."""
    yh = y_hat.reshape(-1)
    yv = y.reshape(-1)
    # Stream the caller's native floating dtype (upcast happens per-tile in
    # the kernel); only non-float inputs are promoted here.
    if not jnp.issubdtype(yh.dtype, jnp.floating):
        yh = yh.astype(jnp.float32)
    if not jnp.issubdtype(yv.dtype, jnp.floating):
        yv = yv.astype(jnp.float32)

    n = yh.shape[0]
    rows = n // LANE
    n_main = rows * LANE

    # Ragged tail (<=127 elements): reduce in plain JAX instead of jnp.pad-ing
    # (which would copy both tensors through HBM just to append <128 values).
    if n_main < n:
        yh_t = yh[n_main:]
        yv_t = yv[n_main:]
        ignore_t = jnp.asarray(ignore_value, dtype=yv_t.dtype)
        valid_t = yv_t != ignore_t
        diff_t = jnp.where(valid_t,
                           yh_t.astype(jnp.float32) - yv_t.astype(jnp.float32),
                           0.0)
        tail_num = jnp.sum(diff_t * diff_t)
        tail_den = jnp.sum(valid_t.astype(jnp.float32))
    else:
        tail_num = jnp.float32(0.0)
        tail_den = jnp.float32(0.0)

    if rows == 0:
        # Tiny input (< 128 elements): wrapper-only path.
        return tail_num / tail_den

    yh2 = yh[:n_main].reshape(rows, LANE)
    yv2 = yv[:n_main].reshape(rows, LANE)

    # Minimum sublane multiple for this dtype pair: f32 -> 8, bf16/f16 -> 16,
    # 8-bit -> 32 (keeps bf16 blocks on their native (16,128) tiling).
    sub = max(8, 32 // yh2.dtype.itemsize, 32 // yv2.dtype.itemsize)
    tr = min(_round_up(tile_rows, sub), _round_up(rows, sub))
    num_tiles = pl.cdiv(rows, tr)

    if num_splits is None:
        num_splits = _default_num_splits()
    num_splits = max(1, min(int(num_splits), num_tiles))
    tiles_per_split = pl.cdiv(num_tiles, num_splits)
    max_tile = num_tiles - 1

    def in_index(s, t):
        # Clamp so the DMA'd block always starts inside the array; any
        # duplicated clamped block is fully masked inside the kernel.
        return (jnp.minimum(s * tiles_per_split + t, max_tile), 0)

    grid = (num_splits, tiles_per_split)

    num_p, den_p = pl.pallas_call(
        functools.partial(
            _masked_mse_kernel,
            ignore_value=float(ignore_value),
            rows=rows,
            tile_rows=tr,
            tiles_per_split=tiles_per_split,
            num_tiles=num_tiles,
        ),
        out_shape=(
            jax.ShapeDtypeStruct((num_splits, LANE), jnp.float32),
            jax.ShapeDtypeStruct((num_splits, LANE), jnp.float32),
        ),
        grid_spec=pltpu.PrefetchScalarGridSpec(
            num_scalar_prefetch=0,
            grid=grid,
            in_specs=[
                pl.BlockSpec((tr, LANE), in_index),
                pl.BlockSpec((tr, LANE), in_index),
            ],
            out_specs=[
                pl.BlockSpec((1, LANE), lambda s, t: (s, 0)),
                pl.BlockSpec((1, LANE), lambda s, t: (s, 0)),
            ],
            scratch_shapes=[
                pltpu.VMEM((SUBLANE, LANE), jnp.float32),  # numerator acc
                pltpu.VMEM((SUBLANE, LANE), jnp.float32),  # denominator acc
            ],
        ),
        compiler_params=pltpu.CompilerParams(
            dimension_semantics=("parallel", "arbitrary"),
            vmem_limit_bytes=32 * 1024 * 1024,
        ),
    )(yh2, yv2)

    total_num = jnp.sum(num_p) + tail_num
    total_den = jnp.sum(den_p) + tail_den
    return total_num / total_den


def masked_mse_loss_ref(y_hat, y, ignore_value):
    """Pure-JAX reference matching the PyTorch module."""
    mask = (y != ignore_value).astype(jnp.float32)
    sq = (y_hat.astype(jnp.float32) - y.astype(jnp.float32)) ** 2
    return jnp.sum(sq * mask) / jnp.sum(mask)


if __name__ == "__main__":
    key = jax.random.PRNGKey(0)
    k1, k2, k3, k4, k5, k6 = jax.random.split(key, 6)

    IGNORE_VALUE = -9999.0

    # --- Main check: NCHW, like the PyTorch inputs --------------------------
    B, C, H, W = 2, 4, 16, 16
    y_hat = jax.random.normal(k1, (B, C, H, W), dtype=jnp.float32)
    y = jax.random.normal(k2, (B, C, H, W), dtype=jnp.float32)
    ignore_mask = jax.random.bernoulli(k3, p=0.3, shape=(B, C, H, W))
    y = jnp.where(ignore_mask, IGNORE_VALUE, y)

    loss = jax.block_until_ready(masked_mse_loss(y_hat, y, IGNORE_VALUE))
    ref = masked_mse_loss_ref(y_hat, y, IGNORE_VALUE)
    assert jnp.allclose(loss, ref, rtol=1e-5, atol=1e-5), (loss, ref)

    # --- Ragged tail check (element count not a multiple of 128) ------------
    y_hat_r = jax.random.normal(k4, (4, 281), dtype=jnp.float32)   # 1124 elems
    y_r = jax.random.normal(k5, (4, 281), dtype=jnp.float32)
    ignore_mask_r = jax.random.bernoulli(k6, p=0.25, shape=(4, 281))
    y_r = jnp.where(ignore_mask_r, IGNORE_VALUE, y_r)

    loss_r = jax.block_until_ready(masked_mse_loss(y_hat_r, y_r, IGNORE_VALUE))
    ref_r = masked_mse_loss_ref(y_hat_r, y_r, IGNORE_VALUE)
    assert jnp.allclose(loss_r, ref_r, rtol=1e-5, atol=1e-5), (loss_r, ref_r)

    # --- Multi-tile / multi-split check (exercise the interior fast path) ---
    y_hat_m = jax.random.normal(k1, (4096,), dtype=jnp.float32)    # 32 rows
    y_m = jnp.where(jax.random.bernoulli(k2, p=0.3, shape=(4096,)),
                    IGNORE_VALUE,
                    jax.random.normal(k3, (4096,), dtype=jnp.float32))
    loss_m = jax.block_until_ready(
        masked_mse_loss(y_hat_m, y_m, IGNORE_VALUE, tile_rows=8, num_splits=2))
    ref_m = masked_mse_loss_ref(y_hat_m, y_m, IGNORE_VALUE)
    assert jnp.allclose(loss_m, ref_m, rtol=1e-5, atol=1e-5), (loss_m, ref_m)

    print("KERNEL_OK")
</pallas_src>

<mosaic_0001>
module attributes {stable_mosaic.version = 11 : i64} {
  func.func @_masked_mse_kernel(%arg0: i32, %arg1: i32, %arg2: memref<16x128xf32, #tpu.memory_space<vmem>>, %arg3: memref<16x128xf32, #tpu.memory_space<vmem>>, %arg4: memref<1x128xf32, #tpu.memory_space<vmem>>, %arg5: memref<1x128xf32, #tpu.memory_space<vmem>>, %arg6: memref<8x128xf32, #tpu.memory_space<vmem>>, %arg7: memref<8x128xf32, #tpu.memory_space<vmem>>) attributes {dimension_semantics = [#tpu.dimension_semantics<parallel>, #tpu.dimension_semantics<arbitrary>], iteration_bounds = array<i64: 1, 1>, scalar_prefetch = 0 : i64, scratch_operands = 2 : i64, tpu.core_type = #tpu.core_type<tc>, window_params = [{transform_indices = @transform_0, window_bounds = array<i64: 16, 128>}, {transform_indices = @transform_1, window_bounds = array<i64: 16, 128>}, {transform_indices = @transform_2, window_bounds = array<i64: 1, 128>}, {transform_indices = @transform_3, window_bounds = array<i64: 1, 128>}]} {
    %c0_i32 = arith.constant 0 : i32
    %0 = arith.cmpi eq, %arg1, %c0_i32 : i32
    %1 = arith.extui %0 : i1 to i32
    %c0_i32_0 = arith.constant 0 : i32
    %2 = arith.cmpi ne, %1, %c0_i32_0 : i32
    scf.if %2 {
      %cst_11 = arith.constant 0.000000e+00 : f32
      %16 = vector.broadcast %cst_11 : f32 to vector<8x128xf32>
      %c0_12 = arith.constant 0 : index
      %c0_13 = arith.constant 0 : index
      %17 = vector.load %arg6[%c0_12, %c0_13] : memref<8x128xf32, #tpu.memory_space<vmem>>, vector<8x128xf32>
      tpu.vector_store %arg6[%c0_12, %c0_13], %16 {strides = array<i32>} : memref<8x128xf32, #tpu.memory_space<vmem>>, vector<8x128xf32>,
      %cst_14 = arith.constant 0.000000e+00 : f32
      %18 = vector.broadcast %cst_14 : f32 to vector<8x128xf32>
      %c0_15 = arith.constant 0 : index
      %c0_16 = arith.constant 0 : index
      %19 = vector.load %arg7[%c0_15, %c0_16] : memref<8x128xf32, #tpu.memory_space<vmem>>, vector<8x128xf32>
      tpu.vector_store %arg7[%c0_15, %c0_16], %18 {strides = array<i32>} : memref<8x128xf32, #tpu.memory_space<vmem>>, vector<8x128xf32>,
    } else {
    }
    %c0 = arith.constant 0 : index
    %c0_1 = arith.constant 0 : index
    %3 = vector.load %arg3[%c0, %c0_1] : memref<16x128xf32, #tpu.memory_space<vmem>>, vector<16x128xf32>
    %c0_2 = arith.constant 0 : index
    %c0_3 = arith.constant 0 : index
    %4 = vector.load %arg2[%c0_2, %c0_3] : memref<16x128xf32, #tpu.memory_space<vmem>>, vector<16x128xf32>
    %c1_i32 = arith.constant 1 : i32
    %5 = arith.muli %arg0, %c1_i32 : i32
    %6 = arith.addi %5, %arg1 : i32
    %c0_i32_4 = arith.constant 0 : i32
    %7 = arith.cmpi slt, %6, %c0_i32_4 : i32
    %8 = arith.extui %7 : i1 to i32
    %cst = arith.constant -9.999000e+03 : f32
    %c0_i32_5 = arith.constant 0 : i32
    %9 = arith.cmpi ne, %8, %c0_i32_5 : i32
    scf.if %9 {
      %16 = vector.broadcast %cst : f32 to vector<16x128xf32>
      %17 = arith.cmpf one, %3, %16 : vector<16x128xf32>
      %18 = arith.subf %4, %3 : vector<16x128xf32>
      %cst_11 = arith.constant 0.000000e+00 : f32
      %19 = vector.broadcast %cst_11 : f32 to vector<16x128xf32>
      %20 = arith.select %17, %18, %19 : vector<16x128xi1>, vector<16x128xf32>
      %21 = arith.mulf %20, %20 : vector<16x128xf32>
      %c0_12 = arith.constant 0 : index
      %c0_13 = arith.constant 0 : index
      %22 = vector.load %arg6[%c0_12, %c0_13] : memref<8x128xf32, #tpu.memory_space<vmem>>, vector<8x128xf32>
      %23 = vector.shape_cast %21 : vector<16x128xf32> to vector<2x8x128xf32>
      %cst_14 = arith.constant dense<0.000000e+00> : vector<8x128xf32>
      %24 = vector.multi_reduction <add>, %23, %cst_14 [0] : vector<2x8x128xf32> to vector<8x128xf32>
      %25 = arith.addf %22, %24 : vector<8x128xf32>
      %c0_15 = arith.constant 0 : index
      %c0_16 = arith.constant 0 : index
      %26 = vector.load %arg6[%c0_15, %c0_16] : memref<8x128xf32, #tpu.memory_space<vmem>>, vector<8x128xf32>
      tpu.vector_store %arg6[%c0_15, %c0_16], %25 {strides = array<i32>} : memref<8x128xf32, #tpu.memory_space<vmem>>, vector<8x128xf32>,
      %c0_17 = arith.constant 0 : index
      %c0_18 = arith.constant 0 : index
      %27 = vector.load %arg7[%c0_17, %c0_18] : memref<8x128xf32, #tpu.memory_space<vmem>>, vector<8x128xf32>
      %28 = arith.extui %17 : vector<16x128xi1> to vector<16x128xi32>
      %29 = arith.sitofp %28 : vector<16x128xi32> to vector<16x128xf32>
      %30 = vector.shape_cast %29 : vector<16x128xf32> to vector<2x8x128xf32>
      %cst_19 = arith.constant dense<0.000000e+00> : vector<8x128xf32>
      %31 = vector.multi_reduction <add>, %30, %cst_19 [0] : vector<2x8x128xf32> to vector<8x128xf32>
      %32 = arith.addf %27, %31 : vector<8x128xf32>
      %c0_20 = arith.constant 0 : index
      %c0_21 = arith.constant 0 : index
      %33 = vector.load %arg7[%c0_20, %c0_21] : memref<8x128xf32, #tpu.memory_space<vmem>>, vector<8x128xf32>
      tpu.vector_store %arg7[%c0_20, %c0_21], %32 {strides = array<i32>} : memref<8x128xf32, #tpu.memory_space<vmem>>, vector<8x128xf32>,
    } else {
    }
    %c0_i32_6 = arith.constant 0 : i32
    %10 = arith.cmpi sge, %6, %c0_i32_6 : i32
    %11 = arith.extui %10 : i1 to i32
    %cst_7 = arith.constant -9.999000e+03 : f32
    %c0_i32_8 = arith.constant 0 : i32
    %12 = arith.cmpi ne, %11, %c0_i32_8 : i32
    scf.if %12 {
      %c16_i32 = arith.constant 16 : i32
      %16 = arith.muli %6, %c16_i32 : i32
      %17 = tpu.iota {dimensions = array<i32: 0>} : vector<16x128xi32>
      %18 = vector.broadcast %16 : i32 to vector<16x128xi32>
      %19 = arith.addi %18, %17 : vector<16x128xi32>
      %c16_i32_11 = arith.constant 16 : i32
      %20 = vector.broadcast %c16_i32_11 : i32 to vector<16x128xi32>
      %21 = arith.cmpi slt, %19, %20 : vector<16x128xi32>
      %22 = vector.broadcast %cst_7 : f32 to vector<16x128xf32>
      %23 = arith.cmpf one, %3, %22 : vector<16x128xf32>
      %24 = arith.andi %21, %23 : vector<16x128xi1>
      %25 = arith.subf %4, %3 : vector<16x128xf32>
      %cst_12 = arith.constant 0.000000e+00 : f32
      %26 = vector.broadcast %cst_12 : f32 to vector<16x128xf32>
      %27 = arith.select %24, %25, %26 : vector<16x128xi1>, vector<16x128xf32>
      %28 = arith.mulf %27, %27 : vector<16x128xf32>
      %c0_13 = arith.constant 0 : index
      %c0_14 = arith.constant 0 : index
      %29 = vector.load %arg6[%c0_13, %c0_14] : memref<8x128xf32, #tpu.memory_space<vmem>>, vector<8x128xf32>
      %30 = vector.shape_cast %28 : vector<16x128xf32> to vector<2x8x128xf32>
      %cst_15 = arith.constant dense<0.000000e+00> : vector<8x128xf32>
      %31 = vector.multi_reduction <add>, %30, %cst_15 [0] : vector<2x8x128xf32> to vector<8x128xf32>
      %32 = arith.addf %29, %31 : vector<8x128xf32>
      %c0_16 = arith.constant 0 : index
      %c0_17 = arith.constant 0 : index
      %33 = vector.load %arg6[%c0_16, %c0_17] : memref<8x128xf32, #tpu.memory_space<vmem>>, vector<8x128xf32>
      tpu.vector_store %arg6[%c0_16, %c0_17], %32 {strides = array<i32>} : memref<8x128xf32, #tpu.memory_space<vmem>>, vector<8x128xf32>,
      %c0_18 = arith.constant 0 : index
      %c0_19 = arith.constant 0 : index
      %34 = vector.load %arg7[%c0_18, %c0_19] : memref<8x128xf32, #tpu.memory_space<vmem>>, vector<8x128xf32>
      %35 = arith.extui %24 : vector<16x128xi1> to vector<16x128xi32>
      %36 = arith.sitofp %35 : vector<16x128xi32> to vector<16x128xf32>
      %37 = vector.shape_cast %36 : vector<16x128xf32> to vector<2x8x128xf32>
      %cst_20 = arith.constant dense<0.000000e+00> : vector<8x128xf32>
      %38 = vector.multi_reduction <add>, %37, %cst_20 [0] : vector<2x8x128xf32> to vector<8x128xf32>
      %39 = arith.addf %34, %38 : vector<8x128xf32>
      %c0_21 = arith.constant 0 : index
      %c0_22 = arith.constant 0 : index
      %40 = vector.load %arg7[%c0_21, %c0_22] : memref<8x128xf32, #tpu.memory_space<vmem>>, vector<8x128xf32>
      tpu.vector_store %arg7[%c0_21, %c0_22], %39 {strides = array<i32>} : memref<8x128xf32, #tpu.memory_space<vmem>>, vector<8x128xf32>,
    } else {
    }
    %c0_i32_9 = arith.constant 0 : i32
    %13 = arith.cmpi eq, %arg1, %c0_i32_9 : i32
    %14 = arith.extui %13 : i1 to i32
    %c0_i32_10 = arith.constant 0 : i32
    %15 = arith.cmpi ne, %14, %c0_i32_10 : i32
    scf.if %15 {
      %c0_11 = arith.constant 0 : index
      %c0_12 = arith.constant 0 : index
      %16 = vector.load %arg6[%c0_11, %c0_12] : memref<8x128xf32, #tpu.memory_space<vmem>>, vector<8x128xf32>
      %cst_13 = arith.constant dense<0.000000e+00> : vector<128xf32>
      %17 = vector.multi_reduction <add>, %16, %cst_13 [0] : vector<8x128xf32> to vector<128xf32>
      %18 = vector.shape_cast %17 : vector<128xf32> to vector<1x128xf32>
      %c0_14 = arith.constant 0 : index
      %c0_15 = arith.constant 0 : index
      %19 = vector.load %arg4[%c0_14, %c0_15] : memref<1x128xf32, #tpu.memory_space<vmem>>, vector<1x128xf32>
      tpu.vector_store %arg4[%c0_14, %c0_15], %18 {strides = array<i32>} : memref<1x128xf32, #tpu.memory_space<vmem>>, vector<1x128xf32>,
      %c0_16 = arith.constant 0 : index
      %c0_17 = arith.constant 0 : index
      %20 = vector.load %arg7[%c0_16, %c0_17] : memref<8x128xf32, #tpu.memory_space<vmem>>, vector<8x128xf32>
      %cst_18 = arith.constant dense<0.000000e+00> : vector<128xf32>
      %21 = vector.multi_reduction <add>, %20, %cst_18 [0] : vector<8x128xf32> to vector<128xf32>
      %22 = vector.shape_cast %21 : vector<128xf32> to vector<1x128xf32>
      %c0_19 = arith.constant 0 : index
      %c0_20 = arith.constant 0 : index
      %23 = vector.load %arg5[%c0_19, %c0_20] : memref<1x128xf32, #tpu.memory_space<vmem>>, vector<1x128xf32>
      tpu.vector_store %arg5[%c0_19, %c0_20], %22 {strides = array<i32>} : memref<1x128xf32, #tpu.memory_space<vmem>>, vector<1x128xf32>,
    } else {
    }
    return
  }
  func.func @transform_0(%arg0: i32, %arg1: i32) -> (i32, i32) {
    %c1_i32 = arith.constant 1 : i32
    %0 = arith.muli %arg0, %c1_i32 : i32
    %1 = arith.addi %0, %arg1 : i32
    %c0_i32 = arith.constant 0 : i32
    %2 = arith.minsi %1, %c0_i32 : i32
    %c0_i32_0 = arith.constant 0 : i32
    %c0_i32_1 = arith.constant 0 : i32
    return %2, %c0_i32_0 : i32, i32
  }
  func.func @transform_1(%arg0: i32, %arg1: i32) -> (i32, i32) {
    %c1_i32 = arith.constant 1 : i32
    %0 = arith.muli %arg0, %c1_i32 : i32
    %1 = arith.addi %0, %arg1 : i32
    %c0_i32 = arith.constant 0 : i32
    %2 = arith.minsi %1, %c0_i32 : i32
    %c0_i32_0 = arith.constant 0 : i32
    %c0_i32_1 = arith.constant 0 : i32
    return %2, %c0_i32_0 : i32, i32
  }
  func.func @transform_2(%arg0: i32, %arg1: i32) -> (i32, i32) {
    %c0_i32 = arith.constant 0 : i32
    %c0_i32_0 = arith.constant 0 : i32
    return %arg0, %c0_i32 : i32, i32
  }
  func.func @transform_3(%arg0: i32, %arg1: i32) -> (i32, i32) {
    %c0_i32 = arith.constant 0 : i32
    %c0_i32_0 = arith.constant 0 : i32
    return %arg0, %c0_i32 : i32, i32
  }
}

</mosaic_0001>

<bundles_post_ra>
// kernel: tpu_custom_call.1
= control target key start
LH: loop header
LB: loop body
LE: loop exit
PB: predicated region body
PF: predicated region fallthrough
CT: control target
= control target key end

     0   :  { %9 = vsyncpa [#allocation5], 0  ;;  %s368_s0 = inlined_call_operand.hbm [shape: f32[16,128], index: 0, kind: input, shape index: {}]   ;;  %s369_s1 = inlined_call_operand.hbm [shape: f32[16,128], index: 1, kind: input, shape index: {}]   ;;  %s370_s2 = inlined_call_operand.hbm [shape: f32[1,128], index: 2, kind: output, shape index: {0}]   ;;  %s371_s3 = inlined_call_operand.hbm [shape: f32[1,128], index: 3, kind: output, shape index: {1}]  }
   0x1   :  { %10 = vsyncpa [#allocation8], 0 }
   0x2   :  { %11 = vsyncpa [#allocation6], 0 }
   0x3   :  { %12 = vsyncpa [#allocation11], 0  ;;  %s293_s12 = smov [#allocation4]   ;;  %s197_s16 = scalar_lea.hbm %s368_s0, 256 }
   0x4   :  { %s24_s13 = sshll.u32 %s293_s12, 4  ;;  %p198_p0 = scmp.ne.s32.totalorder %s368_s0, %s197_s16  ;;  %s25_s13 = int_to_ptr.vmem [resolvable:$true] %s24_s13 }
   0x5   :  { %p201_p1 = scmp.lt.u32.totalorder %s197_s16, %s368_s0 }
   0x7   :  { %p203_p2 = pnand %p201_p1, %p198_p0 }
   0x9   :  { %206 = shalt.err (!%p203_p2)
}
   0xa   :  { %s207_s21 = scalar_lea.vmem %s25_s13, 256  ;;  %p212_p4 = scmp.lt.s32.totalorder %s25_s13, %s25_s13 }
   0xb   :  { %p208_p3 = scmp.ne.s32.totalorder %s25_s13, %s207_s21  ;;  %p213_p5 = scmp.lt.s32.totalorder %s207_s21, %s207_s21 }
   0xd   :  { %p214_p6 = por %p213_p5, %p212_p4 }
   0xf   :  { %p215_p7 = pnand %p214_p6, %p208_p3 }
  0x11   :  { %218 = shalt.err (!%p215_p7)
}
  0x12   :  { %s294_s22 = smov 128   ;;  %s295_s23 = smov 8  }
  0x13   :  { %30 = dma.hbm_to_vmem [thread:$0]  %s368_s0, 256, %s25_s13, [#allocation5], %s294_s22, %s294_s22, %s295_s23  }
  0x14   :  { %s296_s26 = smov [#allocation7]   ;;  %s219_s30 = scalar_lea.hbm %s369_s1, 256 }
  0x15   :  { %s42_s27 = sshll.u32 %s296_s26, 4  ;;  %p220_p8 = scmp.ne.s32.totalorder %s369_s1, %s219_s30  ;;  %s43_s27 = int_to_ptr.vmem [resolvable:$true] %s42_s27 }
  0x16   :  { %p223_p9 = scmp.lt.u32.totalorder %s219_s30, %s369_s1 }
  0x18   :  { %p225_p10 = pnand %p223_p9, %p220_p8 }
  0x1a   :  { %228 = shalt.err (!%p225_p10)
}
  0x1b   :  { %s229_s8 = scalar_lea.vmem %s43_s27, 256  ;;  %p234_p12 = scmp.lt.s32.totalorder %s43_s27, %s43_s27 }
  0x1c   :  { %p230_p11 = scmp.ne.s32.totalorder %s43_s27, %s229_s8  ;;  %p235_p13 = scmp.lt.s32.totalorder %s229_s8, %s229_s8 }
  0x1e   :  { %p236_p0 = por %p235_p13, %p234_p12 }
  0x20   :  { %p237_p1 = pnand %p236_p0, %p230_p11 }
  0x22   :  { %240 = shalt.err (!%p237_p1)
}
  0x23   :  { %48 = dma.hbm_to_vmem [thread:$0]  %s369_s1, 256, %s43_s27, [#allocation8], %s294_s22, %s294_s22, %s295_s23  }
  0x24   :  { %285 = dma.done.wait [#allocation5], 256  }
  0x25   :  { %286 = vsyncadd [#allocation5], 4294967040 }
  0x26   :  { %287 = dma.done.wait [#allocation8], 256  }
  0x27   :  { %288 = vsyncadd [#allocation8], 4294967040  ;;  %v69_v0 = vld [vmem:[#allocation7] sm:$0xff]  ;;  %v70_v1 = vld [vmem:[#allocation7 + $0x8] sm:$0xff]  ;;  %v297_v6 = vmov 0.0   ;;  %s298_s1 = smov [#allocation10]  }
  0x28   :  { %v71_v2 = vld [vmem:[#allocation4] sm:$0xff]  ;;  %v72_v3 = vld [vmem:[#allocation4 + $0x8] sm:$0xff]  ;;  %vm111_vm0 = vcmp.ne.f32.partialorder %v69_v0, -9999.0  ;;  %vm112_vm1 = vcmp.ne.f32.partialorder %v70_v1, -9999.0 }
  0x29   :  { %v115_v4 = vsub.f32 %v71_v2, %v69_v0  ;;  %v116_v5 = vsub.f32 %v72_v3, %v70_v1  ;;  %v188_v7 = vsel %vm111_vm0, 1.0, %v297_v6  ;;  %v189_v8 = vsel %vm112_vm1, 1.0, %v297_v6  ;;  %s168_s10 = sshll.u32 %s298_s1, 4  ;;  %s299_s11 = smov [#allocation9]   ;;  %s169_s10 = int_to_ptr.vmem [resolvable:$true] %s168_s10 }
  0x2a   :  { %v130_v10 = vadd.f32 %v189_v8, %v188_v7  ;;  %s158_s12 = sshll.u32 %s299_s11, 4  ;;  %s241_s13 = scalar_lea.vmem %s169_s10, 16  ;;  %s159_s12 = int_to_ptr.vmem [resolvable:$true] %s158_s12 }
  0x2b   :  { %v117_v9 = vsel %vm111_vm0, %v115_v4, 0.0  ;;  %v118_v11 = vsel %vm112_vm1, %v116_v5, 0.0  ;;  %p242_p2 = scmp.ne.s32.totalorder %s169_s10, %s241_s13  ;;  %s245_s14 = scalar_lea.vmem %s169_s10, 32 }
  0x2c   :  { %v119_v12 = vmul.f32 %v117_v9, %v117_v9  ;;  %v120_v13 = vmul.f32 %v118_v11, %v118_v11  ;;  %v145_v14 = vrot.slane %v130_v10, 4  ;;  %p246_p3 = scmp.lt.s32.totalorder %s169_s10, %s169_s10  ;;  %p247_p4 = scmp.lt.s32.totalorder %s245_s14, %s241_s13 }
  0x2e   :  { %v122_v15 = vadd.f32 %v120_v13, %v119_v12  ;;  %v146_v16 = vadd.f32 %v145_v14, %v130_v10  ;;  %p248_p5 = por %p247_p4, %p246_p3 }
  0x30   :  { %v137_v17 = vrot.slane %v122_v15, 4  ;;  %v147_v18 = vrot.slane %v146_v16, 2  ;;  %p249_p6 = pnand %p248_p5, %p242_p2 }
  0x32   :  { %v138_v19 = vadd.f32 %v137_v17, %v122_v15  ;;  %v148_v20 = vadd.f32 %v147_v18, %v146_v16 }
  0x34   :  { %v139_v21 = vrot.slane %v138_v19, 2  ;;  %v149_v22 = vrot.slane %v148_v20, 1 }
  0x36   :  { %v140_v23 = vadd.f32 %v139_v21, %v138_v19  ;;  %v150_v24 = vadd.f32 %v149_v22, %v148_v20 }
  0x38   :  { %v141_v25 = vrot.slane %v140_v23, 1  ;;  %151 = vst [vmem:[#allocation10] sm:$0x1] %v150_v24 }
  0x39   :  { %252 = shalt.err (!%p249_p6)
}
  0x3a   :  { %s253_s17 = scalar_lea.hbm %s371_s3, 16 }
  0x3b   :  { %p254_p7 = scmp.ne.s32.totalorder %s371_s3, %s253_s17  ;;  %p257_p8 = scmp.lt.u32.totalorder %s253_s17, %s371_s3 }
  0x3d   :  { %p259_p9 = pnand %p257_p8, %p254_p7 }
  0x3f   :  { %262 = shalt.err (!%p259_p9)
}
  0x40   :  { %171 = dma.vmem_to_hbm [thread:$0]  %s169_s10, 16, %s371_s3, [#allocation11]   ;;  %v142_v26 = vadd.f32 %v141_v25, %v140_v23 }
  0x41   :  { %s263_s24 = scalar_lea.vmem %s159_s12, 16  ;;  %s267_s25 = scalar_lea.vmem %s159_s12, 32 }
  0x42   :  { %143 = vst [vmem:[#allocation9] sm:$0x1] %v142_v26  ;;  %p264_p10 = scmp.ne.s32.totalorder %s159_s12, %s263_s24  ;;  %p268_p11 = scmp.lt.s32.totalorder %s159_s12, %s159_s12 }
  0x43   :  { %p269_p12 = scmp.lt.s32.totalorder %s267_s25, %s263_s24 }
  0x45   :  { %p270_p13 = por %p269_p12, %p268_p11 }
  0x47   :  { %p271_p0 = pnand %p270_p13, %p264_p10 }
  0x49   :  { %274 = shalt.err (!%p271_p0)
}
  0x4a   :  { %s275_s28 = scalar_lea.hbm %s370_s2, 16 }
  0x4b   :  { %p276_p1 = scmp.ne.s32.totalorder %s370_s2, %s275_s28  ;;  %p279_p2 = scmp.lt.u32.totalorder %s275_s28, %s370_s2 }
  0x4d   :  { %p281_p3 = pnand %p279_p2, %p276_p1 }
  0x4f   :  { %284 = shalt.err (!%p281_p3)
}
  0x50   :  { %161 = dma.vmem_to_hbm [thread:$0]  %s159_s12, 16, %s370_s2, [#allocation6]  }
  0x51   :  { %289 = dma.done.wait [#allocation6], 16  }
  0x52   :  { %290 = vsyncadd [#allocation6], 4294967280 }
  0x53   :  { %291 = dma.done.wait [#allocation11], 16  }
  0x54   :  { %292 = vsyncadd [#allocation11], 4294967280 }
  0x55   :  { %178 = vsyncpa [#allocation5], 1 }
  0x56   :  { %179 = vsyncpa [#allocation8], 1 }
  0x57   :  { %180 = vsyncpa [#allocation6], 1 }
  0x58   :  { %181 = vsyncpa [#allocation11], 1 }

</bundles_post_ra>
